<compile_context>
chip_gen: v6e
topology: v6e:2x2x1
jax: 0.10.0
libtpu: 0.0.40
codegen_flags: <defaults>
</compile_context>

<pallas_src>
import functools

import jax
import jax.numpy as jnp
from jax import lax
from jax.experimental import pallas as pl
from jax.experimental.pallas import tpu as pltpu

LN_EPS = 1e-12  # BertConfig default layer_norm_eps


# ----------------------------- in-kernel helpers -----------------------------

def _layer_norm(x, g, b):
    # Two-pass variance (avoids E[x^2]-mean^2 cancellation).
    mu = jnp.mean(x, axis=-1, keepdims=True)
    d = x - mu
    var = jnp.mean(d * d, axis=-1, keepdims=True)
    return d * lax.rsqrt(var + LN_EPS) * g + b


def _gelu(x):
    c = 0.7978845608028654  # sqrt(2/pi)
    return 0.5 * x * (1.0 + jnp.tanh(c * (x + 0.044715 * x * x * x)))


# --------------------------------- kernels -----------------------------------

def embed_ln_kernel(wemb_ref, pos_ref, typ_ref, g_ref, b_ref, o_ref):
    # Fused word + position + token-type embedding add and LayerNorm.
    x = wemb_ref[0].astype(jnp.float32) + pos_ref[0] + typ_ref[...]   # (TS, H)
    o_ref[0] = _layer_norm(x, g_ref[...], b_ref[...]).astype(o_ref.dtype)


def bert_layer_kernel(num_heads, separate_kv, *refs):
    if separate_kv:
        (xq_ref, xkv_ref, mask_ref,
         wqkv_ref, bqkv_ref, wo_ref, bo_ref, ln1g_ref, ln1b_ref,
         wi_ref, bi_ref, wf_ref, bf_ref, ln2g_ref, ln2b_ref,
         o_ref, kv_ref, ctx_ref) = refs
    else:
        (xq_ref, mask_ref,
         wqkv_ref, bqkv_ref, wo_ref, bo_ref, ln1g_ref, ln1b_ref,
         wi_ref, bi_ref, wf_ref, bf_ref, ln2g_ref, ln2b_ref,
         o_ref, ctx_ref) = refs
        xkv_ref = None
        kv_ref = None

    xq_b = xq_ref[0]                     # (TQ, H) bf16 query-row tile
    amask = mask_ref[0]                  # (1, S) additive attention mask, f32
    TQ, H = xq_b.shape
    dH = H // num_heads
    scale = 1.0 / (float(dH) ** 0.5)

    bqkv = bqkv_ref[...]                 # (1, 3H) f32

    if separate_kv:
        # Query projection on the tile (weight ref sliced directly -> view).
        q = jnp.dot(xq_b, wqkv_ref[:, :H],
                    preferred_element_type=jnp.float32) + bqkv[:, :H]

        # K/V projection on the full sequence: compute ONCE per batch row
        # (q-tile axis is "arbitrary"; scratch persists across tiles).
        @pl.when(pl.program_id(1) == 0)
        def _():
            kv = jnp.dot(xkv_ref[0], wqkv_ref[:, H:],
                         preferred_element_type=jnp.float32) + bqkv[:, H:]
            kv_ref[...] = kv.astype(jnp.bfloat16)

        def k_h(h):
            return kv_ref[:, h * dH:(h + 1) * dH]

        def v_h(h):
            return kv_ref[:, H + h * dH:H + (h + 1) * dH]
    else:
        # Whole sequence is one tile: single fused QKV matmul (N = 3H).
        qkv = jnp.dot(xq_b, wqkv_ref[...],
                      preferred_element_type=jnp.float32) + bqkv
        q = qkv[:, :H]
        k_all = qkv[:, H:2 * H].astype(jnp.bfloat16)
        v_all = qkv[:, 2 * H:].astype(jnp.bfloat16)

        def k_h(h):
            return k_all[:, h * dH:(h + 1) * dH]

        def v_h(h):
            return v_all[:, h * dH:(h + 1) * dH]

    # Per-head attention; each head's context goes to its static lane slot of
    # a VMEM scratch so the output projection is a single K=H matmul.
    for h in range(num_heads):
        sl = slice(h * dH, (h + 1) * dH)
        qh = q[:, sl].astype(jnp.bfloat16)
        kh = k_h(h)
        vh = v_h(h)
        # Contract on dH directly (no explicit transpose of K).
        s = lax.dot_general(qh, kh, (((1,), (1,)), ((), ())),
                            preferred_element_type=jnp.float32) * scale
        s = s + amask                    # broadcast (1, S) over query rows
        m = jnp.max(s, axis=-1, keepdims=True)
        p = jnp.exp(s - m)
        denom = jnp.sum(p, axis=-1, keepdims=True)
        p = p * pl.reciprocal(denom, approx=True)
        ctx_h = jnp.dot(p.astype(jnp.bfloat16), vh,
                        preferred_element_type=jnp.float32)       # (TQ, dH)
        ctx_ref[:, sl] = ctx_h.astype(jnp.bfloat16)

    # One output projection with full contraction depth K = H.
    attn = jnp.dot(ctx_ref[...], wo_ref[...],
                   preferred_element_type=jnp.float32) + bo_ref[...]

    xq = xq_b.astype(jnp.float32)
    h1 = _layer_norm(xq + attn, ln1g_ref[...], ln1b_ref[...])

    inter = _gelu(jnp.dot(h1.astype(jnp.bfloat16), wi_ref[...],
                          preferred_element_type=jnp.float32) + bi_ref[...])
    ff = jnp.dot(inter.astype(jnp.bfloat16), wf_ref[...],
                 preferred_element_type=jnp.float32) + bf_ref[...]
    o_ref[0] = _layer_norm(h1 + ff, ln2g_ref[...], ln2b_ref[...]).astype(o_ref.dtype)


# ------------------------------- pallas wrappers ------------------------------

def _pick_tile(total, target):
    """Largest multiple-of-8 divisor of `total` that is <= target (else total)."""
    if total <= target:
        return total
    t = (min(target, total) // 8) * 8
    while t >= 8:
        if total % t == 0:
            return t
        t -= 8
    return total


def _vmem_config():
    """Generation-aware VMEM budget + single-buffering of grid-invariant weights."""
    try:
        cap = int(pltpu.get_tpu_info().vmem_capacity_bytes)
    except Exception:
        cap = 128 * 1024 * 1024
    vmem_limit = min(64 * 1024 * 1024, (cap * 3) // 4)   # 64 MiB v5e/v6e, ~48 MiB v7x
    single_buffer = cap <= 96 * 1024 * 1024              # v7x-class (64 MiB / TC)
    return vmem_limit, single_buffer


def pallas_embed_layernorm(wemb, pos, typ, g, b, s_tile=256):
    B, S, H = wemb.shape
    ts = _pick_tile(S, s_tile)
    nst = S // ts
    return pl.pallas_call(
        embed_ln_kernel,
        out_shape=jax.ShapeDtypeStruct((B, S, H), jnp.bfloat16),
        grid=(B, nst),
        in_specs=[pl.BlockSpec((1, ts, H), lambda i, j: (i, j, 0)),
                  pl.BlockSpec((1, ts, H), lambda i, j: (0, j, 0)),
                  pl.BlockSpec((1, H), lambda i, j: (0, 0)),
                  pl.BlockSpec((1, H), lambda i, j: (0, 0)),
                  pl.BlockSpec((1, H), lambda i, j: (0, 0))],
        out_specs=pl.BlockSpec((1, ts, H), lambda i, j: (i, j, 0)),
        compiler_params=pltpu.CompilerParams(
            dimension_semantics=("parallel", "parallel")),
    )(wemb, pos, typ, g, b)


_LAYER_PARAM_NAMES = ["wqkv", "bqkv", "wo", "bo", "ln1g", "ln1b",
                      "wi", "bi", "wf", "bf", "ln2g", "ln2b"]


def pallas_bert_layer(x, amask3, layer, num_heads, q_tile=256, cls_only=False,
                      vmem_limit=None, single_buffer_weights=False):
    B, S, H = x.shape
    if cls_only:
        # Only the CLS row is consumed downstream: compute just the first
        # (sublane-aligned) 8 query rows against full-length K/V.
        tq = 8 if S >= 8 else S
        nqt = 1
    else:
        tq = _pick_tile(S, q_tile)
        nqt = S // tq
    separate_kv = tq < S

    kern = functools.partial(bert_layer_kernel, num_heads, separate_kv)

    in_specs = [pl.BlockSpec((1, tq, H), lambda b, t: (b, t, 0))]
    args = [x]
    if separate_kv:
        # Full-length sequence input for K/V (block index constant along t ->
        # DMA'd once per batch row; the projection itself runs only at t == 0).
        in_specs.append(pl.BlockSpec((1, S, H), lambda b, t: (b, 0, 0)))
        args.append(x)
    in_specs.append(pl.BlockSpec((1, 1, S), lambda b, t: (b, 0, 0)))
    args.append(amask3)

    for name in _LAYER_PARAM_NAMES:
        a = layer[name]
        idx = lambda b, t, n=a.ndim: (0,) * n
        if single_buffer_weights:
            # Grid-invariant weights: single-buffer to halve weight VMEM (v7x).
            spec = pl.BlockSpec(a.shape, idx, pipeline_mode=pl.Buffered(1))
        else:
            spec = pl.BlockSpec(a.shape, idx)
        in_specs.append(spec)
        args.append(a)

    scratch_shapes = []
    if separate_kv:
        scratch_shapes.append(pltpu.VMEM((S, 2 * H), jnp.bfloat16))   # K|V cache
    scratch_shapes.append(pltpu.VMEM((tq, H), jnp.bfloat16))          # per-head ctx

    out_rows = tq * nqt  # == S, except cls_only (== 8)
    return pl.pallas_call(
        kern,
        out_shape=jax.ShapeDtypeStruct((B, out_rows, H), x.dtype),
        grid=(B, nqt),
        in_specs=in_specs,
        out_specs=pl.BlockSpec((1, tq, H), lambda b, t: (b, t, 0)),
        scratch_shapes=scratch_shapes,
        compiler_params=pltpu.CompilerParams(
            dimension_semantics=("parallel", "arbitrary"),
            vmem_limit_bytes=vmem_limit),
    )(*args)


# ----------------------------- model construction -----------------------------

def init_params(key, vocab_size, hidden, intermediate, num_layers, max_pos, type_vocab):
    keys = iter(jax.random.split(key, 3 + num_layers * 6))
    nrm = lambda k, shape: (0.02 * jax.random.normal(k, shape)).astype(jnp.float32)
    params = {
        "word_emb": nrm(next(keys), (vocab_size, hidden)),
        "pos_emb": nrm(next(keys), (max_pos, hidden)),
        "type_emb": nrm(next(keys), (type_vocab, hidden)),
        "emb_ln_g": jnp.ones((1, hidden), jnp.float32),
        "emb_ln_b": jnp.zeros((1, hidden), jnp.float32),
        "layers": [],
    }
    for _ in range(num_layers):
        wq = nrm(next(keys), (hidden, hidden))
        wk = nrm(next(keys), (hidden, hidden))
        wv = nrm(next(keys), (hidden, hidden))
        layer = {
            # Packed QKV weight, stored bf16 (halves weight DMA, feeds MXU bf16).
            "wqkv": jnp.concatenate([wq, wk, wv], axis=1).astype(jnp.bfloat16),
            "bqkv": jnp.zeros((1, 3 * hidden), jnp.float32),
            "wo": nrm(next(keys), (hidden, hidden)).astype(jnp.bfloat16),
            "bo": jnp.zeros((1, hidden), jnp.float32),
            "ln1g": jnp.ones((1, hidden), jnp.float32),
            "ln1b": jnp.zeros((1, hidden), jnp.float32),
            "wi": nrm(next(keys), (hidden, intermediate)).astype(jnp.bfloat16),
            "bi": jnp.zeros((1, intermediate), jnp.float32),
            "wf": nrm(next(keys), (intermediate, hidden)).astype(jnp.bfloat16),
            "bf": jnp.zeros((1, hidden), jnp.float32),
            "ln2g": jnp.ones((1, hidden), jnp.float32),
            "ln2b": jnp.zeros((1, hidden), jnp.float32),
        }
        params["layers"].append(layer)
    return params


def text_encoder_forward(params, input_ids, attention_mask, num_heads, q_tile=256):
    """Equivalent of TextEncoder.forward: returns last_hidden_state[:, 0, :]."""
    B, S = input_ids.shape
    # TODO(synk): move this gather into the embedding kernel (scalar-prefetch
    # input_ids + row-gather DMA) to avoid the (B,S,H) HBM round trip.
    wemb = jnp.take(params["word_emb"], input_ids, axis=0).astype(jnp.bfloat16)
    pos = params["pos_emb"][:S][None, :, :]                       # (1, S, H)
    # token_type_ids default to all-zeros (matches forward(input_ids, attention_mask)).
    typ = params["type_emb"][0:1]                                 # (1, H)
    h = pallas_embed_layernorm(wemb, pos, typ,
                               params["emb_ln_g"], params["emb_ln_b"])

    # Extended additive attention mask (classic BERT -10000 for masked positions).
    amask3 = ((1.0 - attention_mask.astype(jnp.float32)) * -10000.0)[:, None, :]

    vmem_limit, single_buffer = _vmem_config()
    n_layers = len(params["layers"])
    for li, layer in enumerate(params["layers"]):
        h = pallas_bert_layer(h, amask3, layer, num_heads, q_tile=q_tile,
                              cls_only=(li == n_layers - 1),
                              vmem_limit=vmem_limit,
                              single_buffer_weights=single_buffer)
    return h[:, 0, :].astype(jnp.float32)                         # CLS token (idx 0)


# ------------------------------------ main -------------------------------------

if __name__ == "__main__":
    B, S = 2, 8
    HIDDEN, N_HEADS, N_LAYERS, INTER = 32, 4, 2, 64
    VOCAB, MAX_POS, TYPE_VOCAB = 50, 32, 2

    key = jax.random.PRNGKey(0)
    k_param, k_ids, k_ids2 = jax.random.split(key, 3)
    params = init_params(k_param, VOCAB, HIDDEN, INTER, N_LAYERS, MAX_POS, TYPE_VOCAB)

    # Run 1: whole sequence in one query tile (fused QKV path) + CLS-only last layer.
    input_ids = jax.random.randint(k_ids, (B, S), 0, VOCAB, dtype=jnp.int32)
    attention_mask = jnp.array(
        [[1, 1, 1, 1, 1, 1, 1, 1],
         [1, 1, 1, 1, 1, 0, 0, 0]], dtype=jnp.int32)
    cls_emb = text_encoder_forward(params, input_ids, attention_mask, N_HEADS)
    cls_emb = jax.block_until_ready(cls_emb)
    assert cls_emb.shape == (B, HIDDEN) and cls_emb.dtype == jnp.float32
    assert bool(jnp.all(jnp.isfinite(cls_emb)))

    # Run 2: q-tiled path (S=16 in two 8-row query tiles, K/V computed once per
    # batch row into VMEM scratch) + CLS-only final layer with tq < S.
    S2 = 16
    input_ids2 = jax.random.randint(k_ids2, (B, S2), 0, VOCAB, dtype=jnp.int32)
    attention_mask2 = jnp.ones((B, S2), dtype=jnp.int32).at[1, 12:].set(0)
    cls_emb2 = text_encoder_forward(params, input_ids2, attention_mask2, N_HEADS,
                                    q_tile=8)
    cls_emb2 = jax.block_until_ready(cls_emb2)
    assert cls_emb2.shape == (B, HIDDEN)
    assert bool(jnp.all(jnp.isfinite(cls_emb2)))

    print("KERNEL_OK")
</pallas_src>

<mosaic_0001>
module attributes {stable_mosaic.version = 11 : i64} {
  func.func @embed_ln_kernel(%arg0: i32, %arg1: i32, %arg2: memref<1x8x32xbf16, #tpu.memory_space<vmem>>, %arg3: memref<1x8x32xf32, #tpu.memory_space<vmem>>, %arg4: memref<1x32xf32, #tpu.memory_space<vmem>>, %arg5: memref<1x32xf32, #tpu.memory_space<vmem>>, %arg6: memref<1x32xf32, #tpu.memory_space<vmem>>, %arg7: memref<1x8x32xbf16, #tpu.memory_space<vmem>>) attributes {dimension_semantics = [#tpu.dimension_semantics<parallel>, #tpu.dimension_semantics<parallel>], iteration_bounds = array<i64: 2, 1>, scalar_prefetch = 0 : i64, scratch_operands = 0 : i64, tpu.core_type = #tpu.core_type<tc>, window_params = [{transform_indices = @transform_0, window_bounds = array<i64: 1, 8, 32>}, {transform_indices = @transform_1, window_bounds = array<i64: 1, 8, 32>}, {pipeline_mode = #tpu.pipeline_mode<synchronous>, transform_indices = @transform_2, window_bounds = array<i64: 1, 32>}, {pipeline_mode = #tpu.pipeline_mode<synchronous>, transform_indices = @transform_3, window_bounds = array<i64: 1, 32>}, {pipeline_mode = #tpu.pipeline_mode<synchronous>, transform_indices = @transform_4, window_bounds = array<i64: 1, 32>}, {transform_indices = @transform_5, window_bounds = array<i64: 1, 8, 32>}]} {
    %c0 = arith.constant 0 : index
    %c0_0 = arith.constant 0 : index
    %c0_1 = arith.constant 0 : index
    %0 = vector.load %arg2[%c0, %c0_0, %c0_1] : memref<1x8x32xbf16, #tpu.memory_space<vmem>>, vector<1x8x32xbf16>
    %1 = vector.shape_cast %0 : vector<1x8x32xbf16> to vector<8x32xbf16>
    %2 = arith.extf %1 : vector<8x32xbf16> to vector<8x32xf32>
    %c0_2 = arith.constant 0 : index
    %c0_3 = arith.constant 0 : index
    %c0_4 = arith.constant 0 : index
    %3 = vector.load %arg3[%c0_2, %c0_3, %c0_4] : memref<1x8x32xf32, #tpu.memory_space<vmem>>, vector<1x8x32xf32>
    %4 = vector.shape_cast %3 : vector<1x8x32xf32> to vector<8x32xf32>
    %5 = arith.addf %2, %4 : vector<8x32xf32>
    %c0_5 = arith.constant 0 : index
    %c0_6 = arith.constant 0 : index
    %6 = vector.load %arg4[%c0_5, %c0_6] : memref<1x32xf32, #tpu.memory_space<vmem>>, vector<1x32xf32>
    %7 = vector.broadcast %6 : vector<1x32xf32> to vector<8x32xf32>
    %8 = arith.addf %5, %7 : vector<8x32xf32>
    %c0_7 = arith.constant 0 : index
    %c0_8 = arith.constant 0 : index
    %9 = vector.load %arg5[%c0_7, %c0_8] : memref<1x32xf32, #tpu.memory_space<vmem>>, vector<1x32xf32>
    %c0_9 = arith.constant 0 : index
    %c0_10 = arith.constant 0 : index
    %10 = vector.load %arg6[%c0_9, %c0_10] : memref<1x32xf32, #tpu.memory_space<vmem>>, vector<1x32xf32>
    %cst = arith.constant dense<0.000000e+00> : vector<8xf32>
    %11 = vector.multi_reduction <add>, %8, %cst [1] : vector<8x32xf32> to vector<8xf32>
    %12 = vector.shape_cast %11 : vector<8xf32> to vector<8x1xf32>
    %cst_11 = arith.constant 3.200000e+01 : f32
    %13 = vector.broadcast %cst_11 : f32 to vector<8x1xf32>
    %14 = arith.divf %12, %13 : vector<8x1xf32>
    %15 = vector.broadcast %14 : vector<8x1xf32> to vector<8x32xf32>
    %16 = arith.subf %8, %15 : vector<8x32xf32>
    %17 = arith.mulf %16, %16 : vector<8x32xf32>
    %cst_12 = arith.constant dense<0.000000e+00> : vector<8xf32>
    %18 = vector.multi_reduction <add>, %17, %cst_12 [1] : vector<8x32xf32> to vector<8xf32>
    %19 = vector.shape_cast %18 : vector<8xf32> to vector<8x1xf32>
    %cst_13 = arith.constant 3.200000e+01 : f32
    %20 = vector.broadcast %cst_13 : f32 to vector<8x1xf32>
    %21 = arith.divf %19, %20 : vector<8x1xf32>
    %cst_14 = arith.constant 9.99999996E-13 : f32
    %22 = vector.broadcast %cst_14 : f32 to vector<8x1xf32>
    %23 = arith.addf %21, %22 : vector<8x1xf32>
    %24 = math.rsqrt %23 : vector<8x1xf32>
    %25 = vector.broadcast %24 : vector<8x1xf32> to vector<8x32xf32>
    %26 = arith.mulf %16, %25 : vector<8x32xf32>
    %27 = vector.broadcast %9 : vector<1x32xf32> to vector<8x32xf32>
    %28 = arith.mulf %26, %27 : vector<8x32xf32>
    %29 = vector.broadcast %10 : vector<1x32xf32> to vector<8x32xf32>
    %30 = arith.addf %28, %29 : vector<8x32xf32>
    %31 = arith.truncf %30 : vector<8x32xf32> to vector<8x32xbf16>
    %c0_15 = arith.constant 0 : index
    %c0_16 = arith.constant 0 : index
    %c0_17 = arith.constant 0 : index
    %32 = vector.load %arg7[%c0_15, %c0_16, %c0_17] : memref<1x8x32xbf16, #tpu.memory_space<vmem>>, vector<1x8x32xbf16>
    %33 = vector.shape_cast %32 : vector<1x8x32xbf16> to vector<8x32xbf16>
    %34 = vector.shape_cast %31 : vector<8x32xbf16> to vector<1x8x32xbf16>
    tpu.vector_store %arg7[%c0_15, %c0_16, %c0_17], %34 {strides = array<i32>} : memref<1x8x32xbf16, #tpu.memory_space<vmem>>, vector<1x8x32xbf16>,
    return
  }
  func.func @transform_0(%arg0: i32, %arg1: i32) -> (i32, i32, i32) {
    %c0_i32 = arith.constant 0 : i32
    %c0_i32_0 = arith.constant 0 : i32
    return %arg0, %arg1, %c0_i32 : i32, i32, i32
  }
  func.func @transform_1(%arg0: i32, %arg1: i32) -> (i32, i32, i32) {
    %c0_i32 = arith.constant 0 : i32
    %c0_i32_0 = arith.constant 0 : i32
    %c0_i32_1 = arith.constant 0 : i32
    return %c0_i32, %arg1, %c0_i32_0 : i32, i32, i32
  }
  func.func @transform_2(%arg0: i32, %arg1: i32) -> (i32, i32) {
    %c0_i32 = arith.constant 0 : i32
    %c0_i32_0 = arith.constant 0 : i32
    %c0_i32_1 = arith.constant 0 : i32
    return %c0_i32, %c0_i32_0 : i32, i32
  }
  func.func @transform_3(%arg0: i32, %arg1: i32) -> (i32, i32) {
    %c0_i32 = arith.constant 0 : i32
    %c0_i32_0 = arith.constant 0 : i32
    %c0_i32_1 = arith.constant 0 : i32
    return %c0_i32, %c0_i32_0 : i32, i32
  }
  func.func @transform_4(%arg0: i32, %arg1: i32) -> (i32, i32) {
    %c0_i32 = arith.constant 0 : i32
    %c0_i32_0 = arith.constant 0 : i32
    %c0_i32_1 = arith.constant 0 : i32
    return %c0_i32, %c0_i32_0 : i32, i32
  }
  func.func @transform_5(%arg0: i32, %arg1: i32) -> (i32, i32, i32) {
    %c0_i32 = arith.constant 0 : i32
    %c0_i32_0 = arith.constant 0 : i32
    return %arg0, %arg1, %c0_i32 : i32, i32, i32
  }
}

</mosaic_0001>

<bundles_post_ra>
// kernel: tpu_custom_call.1
= control target key start
LH: loop header
LB: loop body
LE: loop exit
PB: predicated region body
PF: predicated region fallthrough
CT: control target
= control target key end

     0   :  { %s870_s0 = inlined_call_operand.hbm [shape: bf16[2,8,32], index: 0, kind: input, shape index: {}]   ;;  %s871_s1 = inlined_call_operand.hbm [shape: f32[1,8,32], index: 1, kind: input, shape index: {}]   ;;  %s872_s2 = inlined_call_operand.vmem [shape: f32[1,32], index: 2, kind: input, shape index: {}]   ;;  %s873_s3 = inlined_call_operand.vmem [shape: f32[1,32], index: 3, kind: input, shape index: {}]   ;;  %s874_s4 = inlined_call_operand.vmem [shape: f32[1,32], index: 4, kind: input, shape index: {}]   ;;  %s875_s5 = inlined_call_operand.hbm [shape: bf16[2,8,32], index: 5, kind: output, shape index: {}]  }
   0x1   :  { %877 = sst [smem:[#allocation11_spill]] %s871_s1 }
   0x2   :  { %10 = vsyncpa [#allocation3], 0 }
   0x3   :  { %12 = vsyncpa [#allocation3 + $0x1], 0 }
   0x4   :  { %13 = vsyncpa [#allocation6], 0 }
   0x5   :  { %14 = vsyncpa [#allocation4], 0 }
   0x6   :  { %16 = vsyncpa [#allocation4 + $0x1], 0  ;;  %s696_s18 = smov 0   ;;  %s698_s19 = smov 0  }
   0x7   :  { %s700_s20 = smov 0   ;;  %s702_s21 = smov 0  }
   0x8   :  { %s704_s22 = smov 0   ;;  %s706_s23 = smov 0  }
   0x9 LB: > { %s430_s24 = sadd.s32 4294967295, %s661_s23   ;;  %s431_s25 = sadd.s32 4294967294, %s661_s23   ;;  %s661_s23 = sphi %s706_s23, %s22_s23   ;;  %s657_s22 = sphi %s704_s22, %s894_s22   ;;  %s653_s21 = sphi %s702_s21, %s893_s21   ;;  %s649_s20 = sphi %s700_s20, %s892_s20   ;;  %s645_s19 = sphi %s698_s19, %s891_s19   ;;  %s641_s18 = sphi %s696_s18, %s890_s18  }
   0xa   : > { %p56_p0 = scmp.ne.s32.totalorder %s645_s19, %s641_s18  ;;  %p730_p1 = scmp.eq.s32.totalorder %s430_s24, 0 }
   0xb   : > { %p734_p2 = scmp.eq.s32.totalorder %s430_s24, 1  ;;  %p177_p3 = scmp.eq.s32.totalorder %s431_s25, 1 }
   0xc   : > { %p740_p4 = por %p730_p1, %p56_p0  ;;  %p432_p5 = scmp.ge.s32.totalorder %s661_s23, 1 }
   0xd   : > { %p745_p6 = por %p177_p3, %p56_p0  ;;  %p184_p7 = scmp.lt.s32.totalorder %s661_s23, 3 }
   0xe   : > { %s880_s28 = scalar_select %p740_p4, 1, 0 }
   0xf   : > { %s881_s29 = scalar_select %p745_p6, 1, 0 }
  0x10   : > { %p750_p8 = pnand %p432_p5, %p184_p7  ;;  %s663_s6 = smov [#allocation5]  }
  0x11   : > { %s199_s7 = sshll.u32 %s663_s6, 4  ;;  %s34_s9 = sadd.s32 1, %s657_s22  ;;  %s200_s7 = int_to_ptr.vmem [resolvable:$true] %s199_s7 }
  0x12   : > { %p456_p10 = pneg %p750_p8  ;;  %s43_s10 = sadd.s32 1, %s649_s20 }
  0x13   : > { %p36_p12 = scmp.ge.s32.totalorder %s34_s9, 2  ;;  %s534_s11 = scalar_lea.vmem %s200_s7, 128 }
  0x14   : > { %p759_p11 = pnand %p456_p10, %p730_p1  ;;  %p535_p0 = scmp.ne.s32.totalorder %s200_s7, %s534_s11 }
  0x15   : > { %p542_p7 = scmp.lt.s32.totalorder %s200_s7, %s200_s7  ;;  %p543_p6 = scmp.lt.s32.totalorder %s534_s11, %s534_s11 }
  0x16   : > { %p525_p13 = pneg %p759_p11 }
  0x17   : > { %p544_p9 = por %p543_p6, %p542_p7 }
  0x18   : > { %p537_p3 = pnand %p535_p0, %p525_p13 }
  0x1a   : > { %p538_p5 = pneg %p537_p3 }
  0x1c   : > { %p545_p4 = pnand %p544_p9, %p538_p5 }
  0x1e   : > { %548 = shalt.err (!%p545_p4)
}
  0x1f   : > { %s884_s1 = sld [smem:[#allocation11_spill]]  ;;  %s896_s9 = smov (%p36_p12, %s34_s9), 0 }
  0x20   : > { %p50_p6 = scmp.ne.s32.totalorder %s649_s20, %s645_s19  ;;  %p51_p4 = scmp.eq.s32.totalorder %s661_s23, 0 }
  0x21   : > { %s38_s14 = ssub.s32 %s657_s22, %s896_s9  ;;  %p469_p9 = scmp.lt.s32.totalorder %s661_s23, 2 }
  0x22   : > { %p41_p10 = scmp.eq.s32.totalorder %s38_s14, 0  ;;  %p52_p13 = por %p51_p4, %p50_p6 }
  0x23   : > { %p782_p0 = por %p734_p2, %p50_p6  ;;  %s219_s16 = sand.u32 1, %s649_s20  }
  0x24   : > { %s788_s17 = scalar_select %p41_p10, %s649_s20, %s43_s10  }
  0x25   : > { %459 = dma.hbm_to_vmem [thread:$0]  (!%p759_p11), %s884_s1, 128, %s200_s7, [#allocation6]  }
  0x26   : > { %s435_s24 = sshll.u32 %s219_s16, 2  ;;  %s436_s25 = sshll.u32 %s657_s22, 6 }
  0x27   : > { %s229_s8 = scalar_lea.hbm %s870_s0, %s436_s25  ;;  %s223_s11 = scalar_lea.vmem [#allocation2], %s435_s24 }
  0x28   : > { %s231_s12 = sshll.u32 %s223_s11, 4  ;;  %p794_p11 = pnand %p469_p9, %p52_p13  ;;  %s232_s12 = int_to_ptr.vmem [resolvable:$true] %s231_s12 }
  0x29   : > { %s220_s27 = scalar_lea.sflag [#allocation3], %s219_s16  ;;  %s562_s14 = scalar_lea.vmem %s232_s12, 64 }
  0x2a   : > { %p551_p2 = pneg %p794_p11  ;;  %p563_p12 = scmp.ne.s32.totalorder %s232_s12, %s562_s14 }
  0x2b   : > { %s664_s10 = smov [#allocation2]  }
  0x2c   : > { %p565_p3 = pnand %p563_p12, %p551_p2  ;;  %s567_s1 = sshll.u32 %s664_s10, 4  ;;  %s568_s1 = int_to_ptr.vmem [resolvable:$false] %s567_s1 }
  0x2d   : > { %s569_s6 = scalar_lea.vmem %s568_s1, 128  ;;  %p570_p7 = scmp.lt.s32.totalorder %s232_s12, %s568_s1 }
  0x2e   : > { %p566_p5 = pneg %p565_p3  ;;  %p571_p6 = scmp.lt.s32.totalorder %s569_s6, %s562_s14 }
  0x30   : > { %p572_p4 = por %p571_p6, %p570_p7 }
  0x32   : > { %p573_p10 = pnand %p572_p4, %p566_p5 }
  0x34   : > { %576 = shalt.err (!%p573_p10)
}
  0x35   : > { %463 = dma.hbm_to_vmem [thread:$0]  (!%p794_p11), %s229_s8, 64, %s232_s12, %s220_s27  }
  0x36   : > { %240 = sbr.rel (%p750_p8) target bundleno = 392 (0x188), region = 40  ;;  %s805_s16 = sand.u32 (!%p750_p8), 1, %s645_s19  }
  0x37   : > { %s438_s24 = sshll.u32 (!%p750_p8), %s805_s16, 2  ;;  %s243_s25 = scalar_lea.sflag (!%p750_p8), [#allocation3], %s805_s16 }
  0x38   : > { %s246_s1 = scalar_lea.vmem (!%p750_p8), [#allocation2], %s438_s24  ;;  %p887_p9 = scmp.ne.s32.totalorder (!%p750_p8), %s880_s28, 0 }
  0x3b   : > { %628 = dma.done.wait (%p887_p9), %s243_s25, 64  }
  0x3c   : > { %630 = vsyncadd (%p887_p9), %s243_s25, 4294967232 }
  0x3d   : > { %632 = dma.done.wait (%p730_p1), [#allocation6], 128  }
  0x3e   : > { %634 = vsyncadd (%p730_p1), [#allocation6], 4294967168  ;;  %v277_v0 = vld [vmem:[%s246_s1] sm:$0xf]  ;;  %v279_v1 = vld [vmem:[#allocation5] sm:$0xff]  ;;  %vm291_vm0 = vcmask 261120  }
  0x3f   : > { %v278_v2 = vunpack.c.l.bf16 %v277_v0  ;;  %v441_v3 = vld [vmem:[%s872_s2] ss:$0 sm:$0xff]  ;;  %s445_s12 = sshll.u32 %s653_s21, 6  ;;  %s276_s13 = scalar_lea.vmem [#allocation7], %s438_s24  ;;  %vm321_vm1 = vcmask 257024  }
  0x40   : > { %v442_v16 = vld [vmem:[%s873_s3] ss:$0 sm:$0xff]  ;;  %s338_s27 = sshll.u32 %s276_s13, 4  ;;  %s336_s6 = scalar_lea.hbm %s875_s5, %s445_s12  ;;  %s339_s27 = int_to_ptr.vmem [resolvable:$true] %s338_s27 }
  0x41   : > { %v280_v4 = vadd.f32 %v279_v1, %v278_v2  ;;  %v443_v18 = vld [vmem:[%s874_s4] ss:$0 sm:$0xff]  ;;  %s324_s25 = scalar_lea.sflag [#allocation4], %s805_s16  ;;  %s577_s1 = scalar_lea.vmem %s339_s27, 64 }
  0x42   : > { %p578_p1 = scmp.ne.s32.totalorder %s339_s27, %s577_s1  ;;  %s665_s30 = smov [#allocation7]  }
  0x43   : > { %v288_v5 = vadd.f32 %v441_v3, %v280_v4  ;;  %s581_s21 = sshll.u32 %s665_s30, 4  ;;  %s582_s21 = int_to_ptr.vmem [resolvable:$false] %s581_s21 }
  0x44   : > { %p579_p8 = pnand %p578_p1, %p782_p0  ;;  %s583_s24 = scalar_lea.vmem %s582_s21, 128 }
  0x45   : > { %v292_v6 = vsel %vm291_vm0, %v288_v5, 0.0  ;;  %p584_p11 = scmp.lt.s32.totalorder %s339_s27, %s582_s21  ;;  %p585_p2 = scmp.lt.s32.totalorder %s583_s24, %s577_s1 }
  0x46   : > { %293 = vadd.xlane.f32.xlu0 %v292_v6  ;;  %p580_p13 = pneg %p579_p8 }
  0x47   : > { %p586_p12 = por %p585_p2, %p584_p11 }
  0x49   : > { %p587_p3 = pnand %p586_p12, %p580_p13 }
  0xcf   : > { %v294_v7 = vpop.xlane.xlu0 %293 }
  0xd0   : > { %v296_v8 = vmul.f32 0.03125, %v294_v7 }
  0xd2   : > { %v297_v9 = vsub.f32 %v288_v5, %v296_v8 }
  0xd4   : > { %v298_v10 = vmul.f32 %v297_v9, %v297_v9 }
  0xd6   : > { %v299_v11 = vsel %vm291_vm0, %v298_v10, 0.0 }
  0xd7   : > { %300 = vadd.xlane.f32.xlu0 %v299_v11 }
 0x160   : > { %v301_v12 = vpop.xlane.xlu0 %300 }
 0x161   : > { %v302_v13 = vmul.f32 0.03125, %v301_v12 }
 0x163   : > { %v303_v14 = vadd.f32 1e-12, %v302_v13 }
 0x165   : > { %521 = vrsqrt.f32 %v303_v14 }
 0x172   : > { %v522_v15 = vpop.eup %521 }
 0x173   : > { %v305_v17 = vmul.f32 %v522_v15, %v297_v9 }
 0x175   : > { %v312_v19 = vmul.f32 %v442_v16, %v305_v17 }
 0x177   : > { %v319_v20 = vadd.f32 %v443_v18, %v312_v19 }
 0x179   : > { %v320_v21 = vpack.c.bf16 %v319_v20, %v319_v20 }
 0x17b   : > { %322 = vst.msk [vmem:[%s276_s13] sm:$0xf] %vm321_vm1, %v320_v21 }
 0x17c   : > { %590 = shalt.err (!%p587_p3)
}
 0x17d   : > { %s591_s7 = scalar_lea.hbm %s336_s6, 64  ;;  %s595_s28 = scalar_lea.hbm %s875_s5, 128 }
 0x17e   : > { %p592_p5 = scmp.ne.s32.totalorder %s336_s6, %s591_s7  ;;  %p596_p4 = scmp.lt.s32.totalorder %s336_s6, %s875_s5 }
 0x17f   : > { %p597_p10 = scmp.lt.s32.totalorder %s595_s28, %s591_s7 }
 0x180   : > { %p593_p7 = pnand %p592_p5, %p782_p0 }
 0x181   : > { %p598_p9 = por %p597_p10, %p596_p4 }
 0x182   : > { %p594_p6 = pneg %p593_p7 }
 0x184   : > { %p599_p1 = pnand %p598_p9, %p594_p6 }
 0x186   : > { %602 = shalt.err (!%p599_p1)
}
 0x187   : > { %454 = dma.vmem_to_hbm [thread:$0]  (%p782_p0), %s339_s27, 64, %s336_s6, %s324_s25  }
 0x188 PF: > { %s350_s12 = sand.u32 1, %s641_s18   ;;  %p888_p8 = scmp.ne.s32.totalorder %s881_s29, 0 }
 0x189   : > { %p889_p13 = scmp.ge.s32.totalorder %s661_s23, 2  ;;  %s351_s13 = scalar_lea.sflag [#allocation4], %s350_s12 }
 0x18b   : > { %p465_p11 = pnand %p889_p13, %p888_p8 }
 0x18d   : > { %p466_p2 = pneg %p465_p11 }
 0x18f   : > { %636 = dma.done.wait (%p466_p2), %s351_s13, 64  }
 0x190   : > { %638 = vsyncadd (%p466_p2), %s351_s13, 4294967232  ;;  %s22_s23 = sadd.s32 1, %s661_s23   ;;  %s890_s18 = smov %s645_s19 }
 0x191   : > { %p19_p12 = scmp.ge.s32.totalorder %s22_s23, 4   ;;  %s891_s19 = smov %s649_s20 }
 0x192   : > { %s892_s20 = smov %s788_s17  ;;  %s893_s21 = smov %s657_s22 }
 0x193   : > { %s894_s22 = smov %s896_s9  ;;  %21 = sbr.rel (!%p19_p12) target bundleno = 9 (0x9), region = 90 }
 0x198   :  { %356 = vsyncpa [#allocation3], 1 }
 0x199   :  { %358 = vsyncpa [#allocation3 + $0x1], 1 }
 0x19a   :  { %359 = vsyncpa [#allocation6], 1 }
 0x19b   :  { %360 = vsyncpa [#allocation4], 1 }
 0x19c   :  { %362 = vsyncpa [#allocation4 + $0x1], 1 }

</bundles_post_ra>
